<compile_context>
chip_gen: v6e
topology: v6e:2x2x1
jax: 0.10.0
libtpu: 0.0.40
codegen_flags: <defaults>
</compile_context>

<pallas_src>
import functools

import jax
import jax.numpy as jnp
from jax.experimental import pallas as pl
from jax.experimental.pallas import tpu as pltpu


def _round_up(x: int, m: int) -> int:
    return ((x + m - 1) // m) * m


# Conservative VMEM budget for tile selection: fits v7x's 64 MiB physical VMEM
# (well under v5e/v6e's 128 MiB) with headroom for compiler internal scratch.
_VMEM_TILE_BUDGET = 40 * 1024 * 1024
# Resident-weight threshold: if padded W fits in this, pin it in VMEM and stream x.
_RESIDENT_W_BYTES = 4 * 1024 * 1024


def _linear_kernel_single(x_ref, w_ref, b_ref, o_ref):
    """grid = (i, j): full-K dot + bias, written straight to output (no scratch)."""
    o_ref[...] = (
        jnp.dot(x_ref[...], w_ref[...], preferred_element_type=jnp.float32)
        + b_ref[...]
    ).astype(o_ref.dtype)


def _linear_kernel_ktiled(x_ref, w_ref, b_ref, o_ref, acc_ref):
    """grid = (i, j, k): accumulate partial products over k, finalize with bias."""
    k = pl.program_id(2)

    @pl.when(k == 0)
    def _():
        acc_ref[...] = jnp.zeros_like(acc_ref)

    acc_ref[...] += jnp.dot(
        x_ref[...], w_ref[...], preferred_element_type=jnp.float32
    )

    @pl.when(k == pl.num_programs(2) - 1)
    def _():
        o_ref[...] = (acc_ref[...] + b_ref[...]).astype(o_ref.dtype)


def _choose_tiles(M, K, N_pad, in_itemsize, out_itemsize, sub):
    """Pick (tm, tn, tk) against a conservative VMEM budget.

    Typical GNN linear layers are tall-skinny (M = num_nodes >> K, N): prefer
    the resident-weight path (tk=K, tn=N_pad) so W + bias stay pinned in VMEM
    and the kernel only streams x tiles; otherwise fall back to a classic
    (i, j, k) tiled matmul with an f32 accumulator.
    """
    cap = _round_up(M, sub)

    def pick_tm(fits):
        for cand in (512, 256, 128, 64, 32, 16, 8):
            if cand % sub:
                continue
            t = min(cand, cap)
            if t % sub:
                continue
            if fits(t):
                return t
        return sub

    # Resident-weight fast path.
    if K * N_pad * in_itemsize <= _RESIDENT_W_BYTES and N_pad <= 1024:
        tn, tk = N_pad, K

        def fits(t):
            return (
                2 * (t * tk + tk * tn) * in_itemsize  # double-buffered x, W
                + 2 * tn * 4                          # double-buffered bias
                + 2 * t * tn * out_itemsize           # double-buffered output
            ) <= _VMEM_TILE_BUDGET

        return pick_tm(fits), tn, tk

    # General tiled path.
    tn = min(N_pad, 512)
    tk = K if K <= 512 else 512

    def fits(t):
        return (
            2 * (t * tk + tk * tn) * in_itemsize
            + 2 * tn * 4
            + 2 * t * tn * out_itemsize
            + t * tn * 4                              # f32 accumulator scratch
        ) <= _VMEM_TILE_BUDGET

    return pick_tm(fits), tn, tk


@functools.partial(jax.jit, static_argnames=("tm", "tn", "tk", "use_bf16"))
def linear_forward(x, weight, bias, *, tm=None, tn=None, tk=None, use_bf16=False):
    """Pallas-backed y = x @ weight + bias.

    x:      (M, K)     weight: (K, N)     bias: (N,)

    Arbitrary M (num_nodes) and non-128-aligned K / N are handled by zero
    padding inside the wrapper; the output is sliced back to (M, N).
    With use_bf16=True the MXU inputs are cast to bf16 (f32 accumulation).
    """
    M, K = x.shape
    K_w, N = weight.shape
    assert K == K_w, "x / weight inner dims mismatch"
    assert bias.shape == (N,)
    out_dtype = x.dtype

    # Lane-dense output: pad out_feats up to a multiple of 128 (zero columns).
    n_pad0 = _round_up(N, 128)

    mxu_dtype = jnp.bfloat16 if use_bf16 else x.dtype
    in_itemsize = jnp.dtype(mxu_dtype).itemsize
    out_itemsize = jnp.dtype(out_dtype).itemsize
    sub = 8 * max(1, 4 // in_itemsize)  # sublane multiple: 8 for f32, 16 for bf16

    a_tm, a_tn, a_tk = _choose_tiles(M, K, n_pad0, in_itemsize, out_itemsize, sub)
    tm = a_tm if tm is None else tm
    tn = a_tn if tn is None else tn
    tk = a_tk if tk is None else tk

    # Normalize / validate tile sizes.
    tm = max(sub, _round_up(min(tm, _round_up(M, sub)), sub))
    if tk >= K:
        tk = K  # full-K block: no reduction axis needed
    else:
        assert tk % 128 == 0, "tk must be a multiple of 128 when K is tiled"
    if tn >= n_pad0:
        tn = n_pad0
    else:
        assert tn % 128 == 0, "tn must be a multiple of 128 when N is tiled"

    M_pad = _round_up(M, tm)
    K_pad = K if tk == K else _round_up(K, tk)
    N_pad = _round_up(n_pad0, tn)
    k_steps = K_pad // tk
    k_tiled = k_steps > 1

    # Pad operands (zeros do not change the result); optional bf16 MXU cast.
    x_p = x.astype(mxu_dtype)
    w_p = weight.astype(mxu_dtype)
    if M_pad != M or K_pad != K:
        x_p = jnp.pad(x_p, ((0, M_pad - M), (0, K_pad - K)))
    if K_pad != K or N_pad != N:
        w_p = jnp.pad(w_p, ((0, K_pad - K), (0, N_pad - N)))
    b_p = bias.astype(jnp.float32)
    if N_pad != N:
        b_p = jnp.pad(b_p, (0, N_pad - N))
    b_2d = b_p.reshape(1, N_pad)

    # Explicit scoped-VMEM limit sized from the chosen tiles (double-buffered
    # inputs + output, plus accumulator scratch when K is tiled), capped so it
    # is safe on v7x's 64 MiB part while unlocking big tiles on v5e/v6e.
    vmem_need = (
        2 * (tm * tk + tk * tn) * in_itemsize
        + 2 * tn * 4
        + 2 * tm * tn * out_itemsize
        + (tm * tn * 4 if k_tiled else 0)
    )
    vmem_limit = int(min(max(vmem_need + (8 << 20), 32 << 20), 56 << 20))

    if k_tiled:
        grid = (M_pad // tm, N_pad // tn, k_steps)
        in_specs = [
            pl.BlockSpec((tm, tk), lambda i, j, k: (i, k)),   # x tile
            pl.BlockSpec((tk, tn), lambda i, j, k: (k, j)),   # W tile
            pl.BlockSpec((1, tn), lambda i, j, k: (0, j)),    # bias tile
        ]
        out_specs = pl.BlockSpec((tm, tn), lambda i, j, k: (i, j))
        scratch_shapes = (pltpu.VMEM((tm, tn), jnp.float32),)
        kernel = _linear_kernel_ktiled
        dim_sem = ("parallel", "parallel", "arbitrary")
    else:
        grid = (M_pad // tm, N_pad // tn)
        in_specs = [
            pl.BlockSpec((tm, tk), lambda i, j: (i, 0)),      # x tile (full K)
            pl.BlockSpec((tk, tn), lambda i, j: (0, j)),      # resident W tile
            pl.BlockSpec((1, tn), lambda i, j: (0, j)),       # bias tile
        ]
        out_specs = pl.BlockSpec((tm, tn), lambda i, j: (i, j))
        scratch_shapes = ()
        kernel = _linear_kernel_single
        dim_sem = ("parallel", "parallel")

    out = pl.pallas_call(
        kernel,
        out_shape=jax.ShapeDtypeStruct((M_pad, N_pad), out_dtype),
        grid_spec=pltpu.PrefetchScalarGridSpec(
            num_scalar_prefetch=0,
            grid=grid,
            in_specs=in_specs,
            out_specs=out_specs,
            scratch_shapes=scratch_shapes,
        ),
        compiler_params=pltpu.CompilerParams(
            dimension_semantics=dim_sem,
            vmem_limit_bytes=vmem_limit,
        ),
    )(x_p, w_p, b_2d)

    return out[:M, :N]


class PallasLinear:
    """JAX/Pallas port of graphwar.nn.linear.Linear (weight=True, bias=True)."""

    def __init__(self, in_feats: int, out_feats: int, key, use_bf16: bool = False):
        self.in_feats = in_feats
        self.out_feats = out_feats
        self.use_bf16 = use_bf16
        # Glorot (Xavier) uniform init, bias = 0 — matches reset_parameters().
        limit = jnp.sqrt(6.0 / (in_feats + out_feats))
        self.weight = jax.random.uniform(
            key, (in_feats, out_feats), dtype=jnp.float32,
            minval=-limit, maxval=limit,
        )
        self.bias = jnp.zeros((out_feats,), dtype=jnp.float32)

    def __call__(self, x):
        # TODO(synk): torch.sparse.mm path (sparse x) has no clean dense-Pallas
        # equivalent here; only the dense x @ W + b hot path is implemented.
        return linear_forward(x, self.weight, self.bias, use_bf16=self.use_bf16)


if __name__ == "__main__":
    key = jax.random.PRNGKey(0)
    k_x, k_w, k_x2, k_w2 = jax.random.split(key, 4)

    # Case 1: small GNN-ish shape (resident-weight path, out_feats padded to 128).
    num_nodes, in_feats, out_feats = 8, 32, 32
    x = jax.random.normal(k_x, (num_nodes, in_feats), dtype=jnp.float32)
    layer = PallasLinear(in_feats, out_feats, k_w)
    y = jax.block_until_ready(layer(x))
    y_ref = x @ layer.weight + layer.bias
    assert y.shape == (num_nodes, out_feats)
    assert jnp.allclose(y, y_ref, atol=1e-5, rtol=1e-5)

    # Case 2: ragged num_nodes / non-aligned feature dims (exercises padding).
    M2, K2, N2 = 300, 96, 48
    x2 = jax.random.normal(k_x2, (M2, K2), dtype=jnp.float32)
    w2 = jax.random.normal(k_w2, (K2, N2), dtype=jnp.float32) * 0.1
    b2 = jnp.linspace(-1.0, 1.0, N2, dtype=jnp.float32)
    y2 = jax.block_until_ready(linear_forward(x2, w2, b2))
    y2_ref = x2 @ w2 + b2
    assert jnp.allclose(y2, y2_ref, atol=1e-4, rtol=1e-4)

    # Case 2b: bf16 MXU inputs (f32 accumulation) — loose-tolerance check.
    y2_bf = jax.block_until_ready(linear_forward(x2, w2, b2, use_bf16=True))
    assert jnp.allclose(y2_bf, y2_ref, atol=1e-1, rtol=5e-2)

    # Case 3: force the K-tiled accumulator path with explicit tiles.
    M3, K3, N3 = 256, 256, 256
    x3 = jax.random.normal(k_x, (M3, K3), dtype=jnp.float32) * 0.05
    w3 = jax.random.normal(k_w, (K3, N3), dtype=jnp.float32) * 0.05
    b3 = jnp.ones((N3,), dtype=jnp.float32) * 0.5
    y3 = jax.block_until_ready(linear_forward(x3, w3, b3, tm=128, tn=128, tk=128))
    assert jnp.allclose(y3, x3 @ w3 + b3, atol=1e-4, rtol=1e-4)

    print("KERNEL_OK")
</pallas_src>

<mosaic_0001>
module attributes {stable_mosaic.version = 11 : i64} {
  func.func @_linear_kernel_single(%arg0: i32, %arg1: i32, %arg2: memref<8x32xf32, #tpu.memory_space<vmem>>, %arg3: memref<32x128xf32, #tpu.memory_space<vmem>>, %arg4: memref<1x128xf32, #tpu.memory_space<vmem>>, %arg5: memref<8x128xf32, #tpu.memory_space<vmem>>) attributes {dimension_semantics = [#tpu.dimension_semantics<parallel>, #tpu.dimension_semantics<parallel>], iteration_bounds = array<i64: 1, 1>, scalar_prefetch = 0 : i64, scratch_operands = 0 : i64, tpu.core_type = #tpu.core_type<tc>, window_params = [{transform_indices = @transform_0, window_bounds = array<i64: 8, 32>}, {transform_indices = @transform_1, window_bounds = array<i64: 32, 128>}, {transform_indices = @transform_2, window_bounds = array<i64: 1, 128>}, {transform_indices = @transform_3, window_bounds = array<i64: 8, 128>}]} {
    %c0 = arith.constant 0 : index
    %c0_0 = arith.constant 0 : index
    %0 = vector.load %arg2[%c0, %c0_0] : memref<8x32xf32, #tpu.memory_space<vmem>>, vector<8x32xf32>
    %c0_1 = arith.constant 0 : index
    %c0_2 = arith.constant 0 : index
    %1 = vector.load %arg3[%c0_1, %c0_2] : memref<32x128xf32, #tpu.memory_space<vmem>>, vector<32x128xf32>
    %cst = arith.constant dense<0.000000e+00> : vector<8x128xf32>
    %2 = tpu.matmul %0, %1, %cst {dimension_numbers = #tpu.dot_dimension_numbers<[1], [0], [0], [1], [0, 0, 1, 1], [], []>} : vector<8x32xf32>, vector<32x128xf32>, vector<8x128xf32> -> vector<8x128xf32>
    %c0_3 = arith.constant 0 : index
    %c0_4 = arith.constant 0 : index
    %3 = vector.load %arg4[%c0_3, %c0_4] : memref<1x128xf32, #tpu.memory_space<vmem>>, vector<1x128xf32>
    %4 = vector.broadcast %3 : vector<1x128xf32> to vector<8x128xf32>
    %5 = arith.addf %2, %4 : vector<8x128xf32>
    %c0_5 = arith.constant 0 : index
    %c0_6 = arith.constant 0 : index
    %6 = vector.load %arg5[%c0_5, %c0_6] : memref<8x128xf32, #tpu.memory_space<vmem>>, vector<8x128xf32>
    tpu.vector_store %arg5[%c0_5, %c0_6], %5 {strides = array<i32>} : memref<8x128xf32, #tpu.memory_space<vmem>>, vector<8x128xf32>,
    return
  }
  func.func @transform_0(%arg0: i32, %arg1: i32) -> (i32, i32) {
    %c0_i32 = arith.constant 0 : i32
    %c0_i32_0 = arith.constant 0 : i32
    return %arg0, %c0_i32 : i32, i32
  }
  func.func @transform_1(%arg0: i32, %arg1: i32) -> (i32, i32) {
    %c0_i32 = arith.constant 0 : i32
    %c0_i32_0 = arith.constant 0 : i32
    return %c0_i32, %arg1 : i32, i32
  }
  func.func @transform_2(%arg0: i32, %arg1: i32) -> (i32, i32) {
    %c0_i32 = arith.constant 0 : i32
    %c0_i32_0 = arith.constant 0 : i32
    return %c0_i32, %arg1 : i32, i32
  }
  func.func @transform_3(%arg0: i32, %arg1: i32) -> (i32, i32) {
    %c0_i32 = arith.constant 0 : i32
    return %arg0, %arg1 : i32, i32
  }
}

</mosaic_0001>

<bundles_post_ra>
// kernel: linear_forward.1
= control target key start
LH: loop header
LB: loop body
LE: loop exit
PB: predicated region body
PF: predicated region fallthrough
CT: control target
= control target key end

     0   :  { %v159_v1 = vmov 0.0   ;;  %vm160_vm0 = vmmov 0   ;;  %s203_s0 = inlined_call_operand.vmem [shape: f32[8,32], index: 0, kind: input, shape index: {}]   ;;  %s204_s1 = inlined_call_operand.vmem [shape: f32[32,128], index: 1, kind: input, shape index: {}]   ;;  %s205_s2 = inlined_call_operand.vmem [shape: f32[1,128], index: 2, kind: input, shape index: {}]   ;;  %s206_s3 = inlined_call_operand.hbm [shape: f32[8,128], index: 3, kind: output, shape index: {}]  }
   0x1   :  { %v19_v0 = vld [vmem:[%s204_s1 + $0x18] sm:$0xff]  ;;  %123 = vmatprep.subr.mxu0 %v159_v1  ;;  %v18_v2 = vld [vmem:[%s204_s1 + $0x10] sm:$0xff]  ;;  %131 = vmatprep.mubr.msk.f32.mxu0 %vm160_vm0, %v159_v1 }
   0x2   :  { %124 = vmatpush3.msra.mxu0 %v19_v0 }
   0x3   :  { %8 = vsyncpa [#allocation3], 0  ;;  %125 = vmatprep.subr.mxu0 %v159_v1  ;;  %v17_v3 = vld [vmem:[%s204_s1 + $0x8] sm:$0xff]  ;;  %v16_v4 = vld [vmem:[%s204_s1] sm:$0xff]  ;;  %vm27_vm1 = vcmask 261120   ;;  %s161_s24 = smov [#allocation2]  }
   0x4   :  { %126 = vmatpush3.msra.mxu0 %v18_v2  ;;  %v15_v5 = vld [vmem:[%s203_s0] sm:$0xff]  ;;  %s108_s25 = sshll.u32 %s161_s24, 4  ;;  %s109_s25 = int_to_ptr.vmem [resolvable:$true] %s108_s25 }
   0x5   :  { %127 = vmatprep.subr.mxu0 %v159_v1  ;;  %v116_v6 = vld [vmem:[%s205_s2] ss:$0 sm:$0xff]  ;;  %s137_s1 = scalar_lea.vmem %s109_s25, 128  ;;  %p142_p1 = scmp.lt.s32.totalorder %s109_s25, %s109_s25 }
   0x6   :  { %128 = vmatpush3.msra.mxu0 %v17_v3  ;;  %p138_p0 = scmp.ne.s32.totalorder %s109_s25, %s137_s1  ;;  %p143_p2 = scmp.lt.s32.totalorder %s137_s1, %s137_s1 }
   0x7   :  { %129 = vmatprep.subr.mxu0 %v159_v1 }
   0x8   :  { %130 = vmatpush3.msra.mxu0 %v16_v4  ;;  %p144_p3 = por %p143_p2, %p142_p1 }
   0x9   :  { %132 = vmatmul.mubr.msk.f32.vlgmr.msra.gmra.mxu0 %vm27_vm1, %v15_v5 }
   0xa   :  { %p145_p4 = pnand %p144_p3, %p138_p0 }
  0xc9   :  { %v97_v7 = vpop.f32.mrf.mxu0 }
  0xca   :  { %v98_v8 = vadd.f32 %v116_v6, %v97_v7 }
  0xcb   :  { %v133_v9 = vpop.f32.mrf.mxu0 }
  0xcc   :  { %101 = vst [vmem:[#allocation2] sm:$0xff] %v98_v8 }
  0xcd   :  { %148 = shalt.err (!%p145_p4)
}
  0xce   :  { %111 = dma.vmem_to_hbm [thread:$0]  %s109_s25, 128, %s206_s3, [#allocation3]  }
  0xcf   :  { %157 = dma.done.wait [#allocation3], 128  }
  0xd0   :  { %158 = vsyncadd [#allocation3], 4294967168 }
  0xd1   :  { %115 = vsyncpa [#allocation3], 1 }

</bundles_post_ra>
